<compile_context>
chip_gen: v7x
topology: tpu7x:2x2x1
jax: 0.10.0
libtpu: 0.0.40
codegen_flags: <defaults>
</compile_context>

<pallas_src>
import functools
import math

import jax
import jax.numpy as jnp
from jax.experimental import pallas as pl
from jax.experimental.pallas import tpu as pltpu

# -----------------------------------------------------------------------------
# configuration (scaled-down but structurally faithful; see TODO notes)
# -----------------------------------------------------------------------------
S = 0.125
IMG_SIZE = 64          # reference default (128) is internally inconsistent with
                       # the hard-coded fusion kernel sizes; 64 keeps every
                       # relative-position table consistent with its feature map
IMGCHAN = 1
NUM_CLASSES = 2
GROUPS = 4
BASE_WIDTH = 64
LAYERS = (1, 1, 1, 1)
AXIAL_EXPANSION = 2
# TODO(synk): fusion kernel sizes are hard-coded (16/32/64/128) in the reference
# for a 256px input; here they are scaled with IMG_SIZE so the relative-position
# tables match the actual feature-map sizes.
FUSION_CFG = [  # (main_channels, aux_channels, num_heads, kernel_size)
    (256, 2048, 8, IMG_SIZE // 16),
    (128, 1024, 16, IMG_SIZE // 8),
    (64, 512, 16, IMG_SIZE // 4),
    (32, 256, 24, IMG_SIZE // 2),
]


def _vmem_limit_bytes():
    # v7x has only 64 MiB of physical VMEM per TensorCore; stay well under it
    # (and leave the compiler headroom) on every generation.
    cap = 64 * 1024 * 1024
    try:
        info = pltpu.get_tpu_info()
        cap = int(getattr(info, "vmem_capacity_bytes", cap))
    except Exception:
        pass
    return int(min(cap * 3 // 4, 96 * 1024 * 1024))


VMEM_LIMIT = _vmem_limit_bytes()


def _round_up(x, m):
    return ((x + m - 1) // m) * m


def _choose_tile(dim, pref):
    """Largest multiple of 128 that divides `dim` and is <= pref (dim % 128 == 0)."""
    best = 128
    t = 128
    while t <= min(dim, pref):
        if dim % t == 0:
            best = t
        t += 128
    return best


# -----------------------------------------------------------------------------
# Pallas kernel: tiled bf16 matmul with f32 accumulation
# -----------------------------------------------------------------------------
def _matmul_kernel(a_ref, b_ref, o_ref, acc_ref):
    @pl.when(pl.program_id(2) == 0)
    def _init():
        acc_ref[...] = jnp.zeros_like(acc_ref)

    acc_ref[...] += jnp.dot(a_ref[...], b_ref[...],
                            preferred_element_type=jnp.float32)

    @pl.when(pl.program_id(2) == pl.num_programs(2) - 1)
    def _done():
        o_ref[...] = acc_ref[...]


@functools.lru_cache(maxsize=None)
def _matmul_call(Mp, Kp, Np):
    TM = _choose_tile(Mp, 256)
    TN = _choose_tile(Np, 256)
    TK = _choose_tile(Kp, 512)
    return pl.pallas_call(
        _matmul_kernel,
        grid=(Mp // TM, Np // TN, Kp // TK),
        in_specs=[
            pl.BlockSpec((TM, TK), lambda i, j, k: (i, k)),
            pl.BlockSpec((TK, TN), lambda i, j, k: (k, j)),
        ],
        out_specs=pl.BlockSpec((TM, TN), lambda i, j, k: (i, j)),
        out_shape=jax.ShapeDtypeStruct((Mp, Np), jnp.float32),
        scratch_shapes=[pltpu.VMEM((TM, TN), jnp.float32)],
        compiler_params=pltpu.CompilerParams(
            dimension_semantics=("parallel", "parallel", "arbitrary"),
            vmem_limit_bytes=VMEM_LIMIT,
        ),
    )


@functools.lru_cache(maxsize=None)
def _matmul_fn(M, K, Kp, Np, n_out):
    Mp = _round_up(M, 128)
    call = _matmul_call(Mp, Kp, Np)

    def run(a, wm):
        ab = a.astype(jnp.bfloat16)
        if Mp != M or Kp != K:
            ab = jnp.pad(ab, ((0, Mp - M), (0, Kp - K)))
        return call(ab, wm)[:M, :n_out]

    return jax.jit(run)


def pallas_matmul(a, wm, n_out):
    """a: (M, K) activation; wm: pre-padded bf16 (Kp, Np) weight matrix."""
    M, K = a.shape
    Kp, Np = wm.shape
    return _matmul_fn(M, K, Kp, Np, n_out)(a, wm)


# -----------------------------------------------------------------------------
# Pallas kernels: axial attention (groups folded into the block)
# -----------------------------------------------------------------------------
def _sim_kernel(q_ref, k_ref, qe_ref, ke_ref, sim_ref, qr_scr, kr_scr):
    # q_ref, k_ref: (BT, G, H, C)     [layout q[z, i, c] = torch q[z, c, i]]
    # qe_ref, ke_ref: (H, C, H)       [qe[i] = q_embedding[:, i, :]]
    # sim_ref: (BT, 3, G, H, H)       [channel order: qk, qr, kr^T]
    BT, G, H, C = q_ref.shape
    Z = BT * G
    q = q_ref[...].reshape(Z, H, C)
    k = k_ref[...].reshape(Z, H, C)

    # qk[z,i,j] = sum_c q[z,i,c] k[z,j,c]  -- batched MXU matmul
    qk = jnp.einsum('zic,zjc->zij', q, k, preferred_element_type=jnp.float32)
    sim_ref[:, 0] = qk.reshape(BT, G, H, H)

    # qr[z,i,j] = sum_c q[z,i,c] qemb[c,i,j]  (and the analogous kr term)
    for i in range(H):
        qr_scr[:, i, :] = jnp.dot(q[:, i, :], qe_ref[i],
                                  preferred_element_type=jnp.float32)
        kr_scr[:, i, :] = jnp.dot(k[:, i, :], ke_ref[i],
                                  preferred_element_type=jnp.float32)
    sim_ref[:, 1] = qr_scr[...].reshape(BT, G, H, H)
    sim_ref[:, 2] = jnp.swapaxes(kr_scr[...], 1, 2).reshape(BT, G, H, H)


@functools.lru_cache(maxsize=None)
def _sim_fn(B, G, H, C, BT):
    call = pl.pallas_call(
        _sim_kernel,
        grid=(B // BT,),
        in_specs=[
            pl.BlockSpec((BT, G, H, C), lambda b: (b, 0, 0, 0)),
            pl.BlockSpec((BT, G, H, C), lambda b: (b, 0, 0, 0)),
            pl.BlockSpec((H, C, H), lambda b: (0, 0, 0)),
            pl.BlockSpec((H, C, H), lambda b: (0, 0, 0)),
        ],
        out_specs=pl.BlockSpec((BT, 3, G, H, H), lambda b: (b, 0, 0, 0, 0)),
        out_shape=jax.ShapeDtypeStruct((B, 3, G, H, H), jnp.float32),
        scratch_shapes=[pltpu.VMEM((BT * G, H, H), jnp.float32),
                        pltpu.VMEM((BT * G, H, H), jnp.float32)],
        compiler_params=pltpu.CompilerParams(
            dimension_semantics=("parallel",),
            vmem_limit_bytes=VMEM_LIMIT,
        ),
    )
    return jax.jit(call)


def _attn_out_kernel(sim_ref, sc_ref, sh_ref, v_ref, ve_ref,
                     sv_ref, sve_ref, sve_scr):
    # sim_ref: (BT, 3, G, H, H) raw logits
    # sc_ref, sh_ref: (3, G, 1, H) batch-norm scale/shift (bn_similarity)
    # v_ref: (BT, G, H, GP)           [v[z, j, c] = torch v[z, c, j]]
    # ve_ref: (H, H, GP)              [ve[i, j, c] = v_embedding[c, i, j]]
    BT, G, H, GP = v_ref.shape
    Z = BT * G

    s = sim_ref[...] * sc_ref[...][None] + sh_ref[...][None]
    logits = jnp.sum(s, axis=1).reshape(Z, H, H)

    m = jnp.max(logits, axis=-1, keepdims=True)
    e = jnp.exp(logits - m)
    p = e * pl.reciprocal(jnp.sum(e, axis=-1, keepdims=True), approx=True)

    v = v_ref[...].reshape(Z, H, GP)
    sv = jnp.einsum('zij,zjc->zic', p, v, preferred_element_type=jnp.float32)
    sv_ref[...] = sv.reshape(BT, G, H, GP)

    # sve[z,i,c] = sum_j p[z,i,j] vemb[c,i,j]
    for i in range(H):
        sve_scr[:, i, :] = jnp.dot(p[:, i, :], ve_ref[i],
                                   preferred_element_type=jnp.float32)
    sve_ref[...] = sve_scr[...].reshape(BT, G, H, GP)


@functools.lru_cache(maxsize=None)
def _attn_out_fn(B, G, H, GP, BT):
    ospec = pl.BlockSpec((BT, G, H, GP), lambda b: (b, 0, 0, 0))
    call = pl.pallas_call(
        _attn_out_kernel,
        grid=(B // BT,),
        in_specs=[
            pl.BlockSpec((BT, 3, G, H, H), lambda b: (b, 0, 0, 0, 0)),
            pl.BlockSpec((3, G, 1, H), lambda b: (0, 0, 0, 0)),
            pl.BlockSpec((3, G, 1, H), lambda b: (0, 0, 0, 0)),
            pl.BlockSpec((BT, G, H, GP), lambda b: (b, 0, 0, 0)),
            pl.BlockSpec((H, H, GP), lambda b: (0, 0, 0)),
        ],
        out_specs=[ospec, ospec],
        out_shape=[jax.ShapeDtypeStruct((B, G, H, GP), jnp.float32)] * 2,
        scratch_shapes=[pltpu.VMEM((BT * G, H, GP), jnp.float32)],
        compiler_params=pltpu.CompilerParams(
            dimension_semantics=("parallel",),
            vmem_limit_bytes=VMEM_LIMIT,
        ),
    )
    return jax.jit(call)


def _pick_bt(B, G, H, cq, gp, budget=6 * 1024 * 1024):
    """Largest divisor of B whose per-step VMEM footprint stays small."""
    per_bt = (6 * G * H * H + 2 * G * H * cq + 4 * G * H * gp) * 4
    bt_max = max(1, budget // max(per_bt, 1))
    bt = 1
    for d in range(1, B + 1):
        if B % d == 0 and d <= bt_max:
            bt = d
    return bt


# -----------------------------------------------------------------------------
# JAX glue ops
# -----------------------------------------------------------------------------
def relu(x):
    return jnp.maximum(x, 0.0)


def bn2d(x, p, eps=1e-5):
    mean = jnp.mean(x, axis=(0, 2, 3), keepdims=True)
    var = jnp.mean((x - mean) ** 2, axis=(0, 2, 3), keepdims=True)
    return (x - mean) * jax.lax.rsqrt(var + eps) * p["g"][None, :, None, None] \
        + p["b"][None, :, None, None]


def _bn_lastdim(x, p, eps=1e-5):
    """BatchNorm with channels on the last axis, stats over all other axes."""
    axes = tuple(range(x.ndim - 1))
    mean = jnp.mean(x, axis=axes)
    var = jnp.mean((x - mean) ** 2, axis=axes)
    return (x - mean) * jax.lax.rsqrt(var + eps) * p["g"] + p["b"]


def conv2d(x, cp, stride=1, padding=0):
    """NCHW convolution via im2col + tiled bf16 Pallas MXU matmul."""
    # TODO(synk): the im2col patch matrix is still materialized in HBM by XLA
    # glue; kernel-side patch extraction would remove one HBM round trip.
    O, k = cp["o"], cp["k"]
    N, Cin, H, W = x.shape
    xb = x.astype(jnp.bfloat16)
    if padding:
        xb = jnp.pad(xb, ((0, 0), (0, 0), (padding, padding), (padding, padding)))
    Ho = (H + 2 * padding - k) // stride + 1
    Wo = (W + 2 * padding - k) // stride + 1
    cols = []
    for i in range(k):
        for j in range(k):
            cols.append(xb[:, :, i:i + stride * (Ho - 1) + 1:stride,
                               j:j + stride * (Wo - 1) + 1:stride])
    col = jnp.stack(cols, axis=2).reshape(N, Cin * k * k, Ho * Wo)
    a = jnp.transpose(col, (0, 2, 1)).reshape(N * Ho * Wo, Cin * k * k)
    out = pallas_matmul(a, cp["wm"], O)
    out = jnp.transpose(out.reshape(N, Ho, Wo, O), (0, 3, 1, 2))
    if cp["b"] is not None:
        out = out + cp["b"][None, :, None, None]
    return out


def maxpool2d(x):
    # 3x3, stride 2, padding 1 (ResNet stem)
    N, C, H, W = x.shape
    xp = jnp.pad(x, ((0, 0), (0, 0), (1, 1), (1, 1)), constant_values=-jnp.inf)
    Ho = (H + 2 - 3) // 2 + 1
    Wo = (W + 2 - 3) // 2 + 1
    out = None
    for i in range(3):
        for j in range(3):
            p = xp[:, :, i:i + 2 * (Ho - 1) + 1:2, j:j + 2 * (Wo - 1) + 1:2]
            out = p if out is None else jnp.maximum(out, p)
    return out


def avg_pool2d(x, k):
    N, C, H, W = x.shape
    return x.reshape(N, C, H // k, k, W // k, k).mean(axis=(3, 5))


def conv_transpose_2x(x, w, b):
    # ConvTranspose2d(1, 1, kernel_size=2, stride=2)
    N, C, H, W = x.shape
    y = x[:, :, :, None, :, None] * w.reshape(1, 1, 1, 2, 1, 2)
    return y.reshape(N, C, 2 * H, 2 * W) + b.reshape(1, 1, 1, 1)


def upsample_bilinear_2x(x):
    # F.interpolate(scale_factor=2, mode='bilinear', align_corners=False)
    def idx_w(size):
        src = (jnp.arange(2 * size, dtype=jnp.float32) + 0.5) / 2.0 - 0.5
        src = jnp.maximum(src, 0.0)
        i0 = jnp.minimum(jnp.floor(src).astype(jnp.int32), size - 1)
        i1 = jnp.minimum(i0 + 1, size - 1)
        w1 = src - i0.astype(jnp.float32)
        return i0, i1, 1.0 - w1, w1

    N, C, H, W = x.shape
    i0, i1, a0, a1 = idx_w(H)
    x = x[:, :, i0, :] * a0[None, None, :, None] + x[:, :, i1, :] * a1[None, None, :, None]
    j0, j1, b0, b1 = idx_w(W)
    x = x[:, :, :, j0] * b0 + x[:, :, :, j1] * b1
    return x


# -----------------------------------------------------------------------------
# Axial attention / blocks / fusion / resnet branch
# -----------------------------------------------------------------------------
def axial_attention(x, p, groups, kernel_size, stride=1, width=False):
    """AxialAttention.forward.  x: NCHW."""
    if width:
        xp = jnp.transpose(x, (0, 2, 1, 3))   # (N, H, C, W): attend along W
    else:
        xp = jnp.transpose(x, (0, 3, 1, 2))   # (N, W, C, H): attend along H
    N, Wd, C, H = xp.shape
    assert H == kernel_size, (H, kernel_size)
    B = N * Wd
    out_planes = p["n_qkv"] // 2
    gp = out_planes // groups
    cq = gp // 2

    # qkv_transform (1x1 Conv1d, no bias) as a tiled bf16 Pallas MXU matmul
    a = jnp.transpose(xp, (0, 1, 3, 2)).reshape(B * H, C)
    qkv = pallas_matmul(a, p["w_qkv_m"], p["n_qkv"]).reshape(B, H, 2 * out_planes)
    qkv = _bn_lastdim(qkv, p["bn_qkv"])                   # BatchNorm1d (batch stats)
    qkv = qkv.reshape(B, H, groups, 2 * gp).transpose(0, 2, 1, 3)   # (B, G, H, 2gp)
    q = qkv[..., :cq]
    k = qkv[..., cq:2 * cq]
    v = qkv[..., 2 * cq:]

    # relative position embeddings (kernel-friendly layouts)
    ks = kernel_size
    rel_idx = (jnp.arange(ks)[:, None] - jnp.arange(ks)[None, :] + ks - 1).reshape(-1)
    all_emb = jnp.take(p["relative"], rel_idx, axis=1).reshape(gp * 2, ks, ks)
    q_emb = jnp.transpose(all_emb[:cq], (1, 0, 2))          # (H, C, H)
    k_emb = jnp.transpose(all_emb[cq:2 * cq], (1, 0, 2))    # (H, C, H)
    v_emb = jnp.transpose(all_emb[2 * cq:], (1, 2, 0))      # (H, H, gp)

    BT = _pick_bt(B, groups, H, cq, gp)

    # Pallas kernel 1: qk / qr / kr^T similarity logits
    sim = _sim_fn(B, groups, H, cq, BT)(q, k, q_emb, k_emb)   # (B, 3, G, H, H)

    # bn_similarity batch statistics -> per-(term, group) scale/shift,
    # normalization is applied inside kernel 2 (no extra HBM round trip).
    mean = jnp.mean(sim, axis=(0, 3, 4))
    var = jnp.mean((sim - mean[None, :, :, None, None]) ** 2, axis=(0, 3, 4))
    scale = p["bn_sim"]["g"].reshape(3, groups) * jax.lax.rsqrt(var + 1e-5)
    shift = p["bn_sim"]["b"].reshape(3, groups) - mean * scale
    scale4 = jnp.broadcast_to(scale[:, :, None, None], (3, groups, 1, H))
    shift4 = jnp.broadcast_to(shift[:, :, None, None], (3, groups, 1, H))

    # Pallas kernel 2: BN-apply + 3-term sum + softmax + weighted sums
    sv, sve = _attn_out_fn(B, groups, H, gp, BT)(sim, scale4, shift4, v, v_emb)
    # sv, sve: (B, G, H, gp) in [z, i, c] layout

    # bn_output (channel order g*2gp + 2c + {sv:0, sve:1}) then pair-sum
    g_out = p["bn_out"]["g"].reshape(groups, gp, 2)
    b_out = p["bn_out"]["b"].reshape(groups, gp, 2)

    def _bn_branch(t, gg, bb, eps=1e-5):
        m = jnp.mean(t, axis=(0, 2), keepdims=True)
        vv = jnp.mean((t - m) ** 2, axis=(0, 2), keepdims=True)
        return (t - m) * jax.lax.rsqrt(vv + eps) * gg[None, :, None, :] \
            + bb[None, :, None, :]

    o = _bn_branch(sv, g_out[..., 0], b_out[..., 0]) \
        + _bn_branch(sve, g_out[..., 1], b_out[..., 1])
    out = jnp.transpose(o, (0, 1, 3, 2)).reshape(N, Wd, out_planes, H)

    if width:
        out = jnp.transpose(out, (0, 2, 1, 3))
    else:
        out = jnp.transpose(out, (0, 2, 3, 1))
    if stride > 1:
        out = avg_pool2d(out, stride)
    return out


# TODO(synk): the reference's `block` constructor arg is an external class; the
# canonical AxialBlock (expansion=2: conv_down -> axial-H -> axial-W(+stride)
# -> conv_up, residual) used with this architecture is reconstructed here.
def axial_block_forward(x, p, groups, ks, stride):
    out = relu(bn2d(conv2d(x, p["conv_down"]), p["bn1"]))
    out = axial_attention(out, p["attn_h"], groups, ks, stride=1, width=False)
    out = axial_attention(out, p["attn_w"], groups, ks, stride=stride, width=True)
    out = relu(out)
    out = bn2d(conv2d(out, p["conv_up"]), p["bn2"])
    identity = x
    if p["down"] is not None:
        identity = bn2d(conv2d(x, p["down"]["conv"], stride=stride), p["down"]["bn"])
    return relu(out + identity)


def bottleneck_forward(x, p, stride):
    out = relu(bn2d(conv2d(x, p["conv1"]), p["bn1"]))
    out = relu(bn2d(conv2d(out, p["conv2"], stride=stride, padding=1), p["bn2"]))
    out = bn2d(conv2d(out, p["conv3"]), p["bn3"])
    idn = bn2d(conv2d(x, p["down_conv"], stride=stride), p["down_bn"])
    return relu(out + idn)


def fusion_forward(f_main, f_aux, p, heads, ks):
    comb = jnp.concatenate([f_main, f_aux], axis=1)
    att = axial_attention(comb, p["attn_h"], heads, ks, width=True)
    att = axial_attention(att, p["attn_w"], heads, ks, width=False)
    att = att + comb
    # NOTE: the reference also computes batch_norm + FFN(conv1x1(att)) here but
    # immediately overwrites it with conv1x1(att); the dead branch is omitted.
    return conv2d(att, p["conv1x1"])


# -----------------------------------------------------------------------------
# deterministic parameter construction
# -----------------------------------------------------------------------------
class _Keys:
    def __init__(self, seed):
        self._key = jax.random.PRNGKey(seed)

    def __call__(self):
        self._key, sub = jax.random.split(self._key)
        return sub


def _prep_weight_matrix(w2d):
    """(K, N) f32 -> bf16, padded to multiples of 128 on both axes."""
    K, N = w2d.shape
    Kp, Np = _round_up(K, 128), _round_up(N, 128)
    wb = w2d.astype(jnp.bfloat16)
    if (Kp, Np) != (K, N):
        wb = jnp.pad(wb, ((0, Kp - K), (0, Np - N)))
    return wb


def init_conv(kg, cin, cout, k, bias=False):
    w = jax.random.normal(kg(), (cout, cin, k, k), jnp.float32) / math.sqrt(cin * k * k)
    return {"wm": _prep_weight_matrix(w.reshape(cout, cin * k * k).T),
            "b": jnp.zeros((cout,), jnp.float32) if bias else None,
            "o": cout, "k": k}


def init_bn(c):
    return {"g": jnp.ones((c,), jnp.float32), "b": jnp.zeros((c,), jnp.float32)}


def init_axial_attn(kg, in_planes, out_planes, groups, ks):
    gp = out_planes // groups
    w_qkv = jax.random.normal(kg(), (out_planes * 2, in_planes), jnp.float32) \
        * math.sqrt(1.0 / in_planes)
    return {
        "w_qkv_m": _prep_weight_matrix(w_qkv.T),
        "n_qkv": out_planes * 2,
        "bn_qkv": init_bn(out_planes * 2),
        "bn_sim": init_bn(groups * 3),
        "bn_out": init_bn(out_planes * 2),
        "relative": jax.random.normal(kg(), (gp * 2, ks * 2 - 1), jnp.float32)
                    * math.sqrt(1.0 / gp),
    }


def init_axial_block(kg, inplanes, planes, groups, base_width, ks, stride, downsample):
    width = int(planes * (base_width / 64.0))
    p = {
        "conv_down": init_conv(kg, inplanes, width, 1),
        "bn1": init_bn(width),
        "attn_h": init_axial_attn(kg, width, width, groups, ks),
        "attn_w": init_axial_attn(kg, width, width, groups, ks),
        "conv_up": init_conv(kg, width, planes * AXIAL_EXPANSION, 1),
        "bn2": init_bn(planes * AXIAL_EXPANSION),
        "down": None,
    }
    if downsample:
        p["down"] = {"conv": init_conv(kg, inplanes, planes * AXIAL_EXPANSION, 1),
                     "bn": init_bn(planes * AXIAL_EXPANSION)}
    return p


def init_bottleneck(kg, cin, width, stride):
    del stride
    return {
        "conv1": init_conv(kg, cin, width, 1), "bn1": init_bn(width),
        "conv2": init_conv(kg, width, width, 3), "bn2": init_bn(width),
        "conv3": init_conv(kg, width, width * 4, 1), "bn3": init_bn(width * 4),
        "down_conv": init_conv(kg, cin, width * 4, 1), "down_bn": init_bn(width * 4),
    }


def init_fusion(kg, main_c, aux_c, heads, ks):
    comb = main_c + aux_c
    return {
        "attn_h": init_axial_attn(kg, comb, comb, heads, ks),
        "attn_w": init_axial_attn(kg, comb, comb, heads, ks),
        "conv1x1": init_conv(kg, comb, main_c, 1, bias=True),
    }


def init_model(seed=1):
    kg = _Keys(seed)
    inplanes = int(64 * S)                       # 8
    P, cfg = {}, {}
    P["conv1"] = init_conv(kg, IMGCHAN, inplanes, 7)
    P["bn1"] = init_bn(inplanes)
    P["conv2"] = init_conv(kg, inplanes, 128, 3)
    P["bn2"] = init_bn(128)
    P["conv3"] = init_conv(kg, 128, inplanes, 3)
    P["bn3"] = init_bn(inplanes)

    layer_specs = [
        (int(128 * S), LAYERS[0], IMG_SIZE // 2, 1),
        (int(256 * S), LAYERS[1], IMG_SIZE // 2, 2),
        (int(512 * S), LAYERS[2], IMG_SIZE // 4, 2),
        (int(1024 * S), LAYERS[3], IMG_SIZE // 8, 2),
    ]
    P["layers"], cfg["layers"] = [], []
    for planes, blocks, ks, stride in layer_specs:
        bl_p, bl_c = [], []
        for bi in range(blocks):
            st = stride if bi == 0 else 1
            k_this = ks if bi == 0 else (ks // 2 if stride != 1 else ks)
            need_down = bi == 0 and (st != 1 or inplanes != planes * AXIAL_EXPANSION)
            bl_p.append(init_axial_block(kg, inplanes, planes, GROUPS, BASE_WIDTH,
                                         k_this, st, need_down))
            bl_c.append((GROUPS, k_this, st))
            inplanes = planes * AXIAL_EXPANSION
        P["layers"].append(bl_p)
        cfg["layers"].append(bl_c)

    P["decoder2"] = init_conv(kg, int(1024 * 2 * S), int(1024 * S), 3, bias=True)
    P["decoder3"] = init_conv(kg, int(1024 * S), int(512 * S), 3, bias=True)
    P["decoder4"] = init_conv(kg, int(512 * S), int(256 * S), 3, bias=True)
    P["decoder5"] = init_conv(kg, int(256 * S), int(128 * S), 3, bias=True)
    P["adjust"] = init_conv(kg, int(128 * S), NUM_CLASSES, 1, bias=True)
    P["upsample"] = {"w": jax.random.normal(kg(), (1, 1, 2, 2), jnp.float32) * 0.5,
                     "b": jnp.zeros((1,), jnp.float32)}

    # TODO(synk): the reference uses torchvision resnet50 (3-channel stem,
    # [3,4,6,3] bottlenecks); a structurally equivalent bottleneck branch with
    # an IMGCHAN-channel stem and one bottleneck per stage is used so the script
    # is self-contained — feature channels (256/512/1024/2048) and strides match.
    P["res_stem"] = {"conv": init_conv(kg, IMGCHAN, 64, 7), "bn": init_bn(64)}
    P["res_blocks"], cfg["res_strides"] = [], [1, 2, 2, 2]
    rin = 64
    for width, stride in [(64, 1), (128, 2), (256, 2), (512, 2)]:
        P["res_blocks"].append(init_bottleneck(kg, rin, width, stride))
        rin = width * 4

    P["fusions"] = [init_fusion(kg, m, a, h, ks) for m, a, h, ks in FUSION_CFG]
    return P, cfg


# -----------------------------------------------------------------------------
# full forward pass
# -----------------------------------------------------------------------------
def axial_res_unet_forward(x, P, cfg):
    x_cnn = conv_transpose_2x(x, P["upsample"]["w"], P["upsample"]["b"])

    h = relu(bn2d(conv2d(x, P["conv1"], stride=2, padding=3), P["bn1"]))
    h = relu(bn2d(conv2d(h, P["conv2"], padding=1), P["bn2"]))
    h = relu(bn2d(conv2d(h, P["conv3"], padding=1), P["bn3"]))

    for layer_p, layer_c in zip(P["layers"], cfg["layers"]):
        for bp, (g, ks, st) in zip(layer_p, layer_c):
            h = axial_block_forward(h, bp, g, ks, st)
    current = h                                   # x4

    # ResNet branch features (computed once, selected by spatial size; the
    # reference recomputes the branch per request with identical results)
    r = relu(bn2d(conv2d(x_cnn, P["res_stem"]["conv"], stride=2, padding=3),
                  P["res_stem"]["bn"]))
    r = maxpool2d(r)
    res_feats = {}
    for bp, st in zip(P["res_blocks"], cfg["res_strides"]):
        r = bottleneck_forward(r, bp, st)
        res_feats[r.shape[2]] = r

    decoders = [P["decoder2"], P["decoder3"], P["decoder4"], P["decoder5"]]
    for idx, dec in enumerate(decoders):
        _, _, heads, ks = FUSION_CFG[idx]
        aux = res_feats[current.shape[2]]
        fused = fusion_forward(current, aux, P["fusions"][idx], heads, ks)
        current = conv2d(fused, dec, padding=1)
        current = upsample_bilinear_2x(current)

    return conv2d(current, P["adjust"])


if __name__ == "__main__":
    params, cfg = init_model(seed=1)
    x = jax.random.normal(jax.random.PRNGKey(0),
                          (2, IMGCHAN, IMG_SIZE, IMG_SIZE), jnp.float32)
    out = axial_res_unet_forward(x, params, cfg)
    out = jax.block_until_ready(out)
    assert out.shape == (2, NUM_CLASSES, IMG_SIZE, IMG_SIZE), out.shape
    assert bool(jnp.all(jnp.isfinite(out)))
    print("KERNEL_OK")
</pallas_src>

<mosaic_0001>
module attributes {stable_mosaic.version = 11 : i64} {
  func.func @_matmul_kernel(%arg0: i32, %arg1: i32, %arg2: i32, %arg3: memref<256x128xbf16, #tpu.memory_space<vmem>>, %arg4: memref<128x128xbf16, #tpu.memory_space<vmem>>, %arg5: memref<256x128xf32, #tpu.memory_space<vmem>>, %arg6: memref<256x128xf32, #tpu.memory_space<vmem>>) attributes {dimension_semantics = [#tpu.dimension_semantics<parallel>, #tpu.dimension_semantics<parallel>, #tpu.dimension_semantics<arbitrary>], iteration_bounds = array<i64: 8, 1, 1>, scalar_prefetch = 0 : i64, scratch_operands = 1 : i64, tpu.core_type = #tpu.core_type<tc>, window_params = [{transform_indices = @transform_0, window_bounds = array<i64: 256, 128>}, {transform_indices = @transform_1, window_bounds = array<i64: 128, 128>}, {transform_indices = @transform_2, window_bounds = array<i64: 256, 128>}]} {
    %c0_i32 = arith.constant 0 : i32
    %0 = arith.cmpi eq, %arg2, %c0_i32 : i32
    %1 = arith.extui %0 : i1 to i32
    %c0_i32_0 = arith.constant 0 : i32
    %2 = arith.cmpi ne, %1, %c0_i32_0 : i32
    scf.if %2 {
      %cst_10 = arith.constant 0.000000e+00 : f32
      %12 = vector.broadcast %cst_10 : f32 to vector<256x128xf32>
      %c0_11 = arith.constant 0 : index
      %c0_12 = arith.constant 0 : index
      %13 = vector.load %arg6[%c0_11, %c0_12] : memref<256x128xf32, #tpu.memory_space<vmem>>, vector<256x128xf32>
      tpu.vector_store %arg6[%c0_11, %c0_12], %12 {strides = array<i32>} : memref<256x128xf32, #tpu.memory_space<vmem>>, vector<256x128xf32>,
    } else {
    }
    %c0 = arith.constant 0 : index
    %c0_1 = arith.constant 0 : index
    %3 = vector.load %arg6[%c0, %c0_1] : memref<256x128xf32, #tpu.memory_space<vmem>>, vector<256x128xf32>
    %c0_2 = arith.constant 0 : index
    %c0_3 = arith.constant 0 : index
    %4 = vector.load %arg3[%c0_2, %c0_3] : memref<256x128xbf16, #tpu.memory_space<vmem>>, vector<256x128xbf16>
    %c0_4 = arith.constant 0 : index
    %c0_5 = arith.constant 0 : index
    %5 = vector.load %arg4[%c0_4, %c0_5] : memref<128x128xbf16, #tpu.memory_space<vmem>>, vector<128x128xbf16>
    %cst = arith.constant dense<0.000000e+00> : vector<256x128xf32>
    %6 = tpu.matmul %4, %5, %cst {dimension_numbers = #tpu.dot_dimension_numbers<[1], [0], [0], [1], [0, 0, 1, 1], [], []>} : vector<256x128xbf16>, vector<128x128xbf16>, vector<256x128xf32> -> vector<256x128xf32>
    %7 = arith.addf %3, %6 : vector<256x128xf32>
    %c0_6 = arith.constant 0 : index
    %c0_7 = arith.constant 0 : index
    %8 = vector.load %arg6[%c0_6, %c0_7] : memref<256x128xf32, #tpu.memory_space<vmem>>, vector<256x128xf32>
    tpu.vector_store %arg6[%c0_6, %c0_7], %7 {strides = array<i32>} : memref<256x128xf32, #tpu.memory_space<vmem>>, vector<256x128xf32>,
    %c0_i32_8 = arith.constant 0 : i32
    %9 = arith.cmpi eq, %arg2, %c0_i32_8 : i32
    %10 = arith.extui %9 : i1 to i32
    %c0_i32_9 = arith.constant 0 : i32
    %11 = arith.cmpi ne, %10, %c0_i32_9 : i32
    scf.if %11 {
      %c0_10 = arith.constant 0 : index
      %c0_11 = arith.constant 0 : index
      %12 = vector.load %arg6[%c0_10, %c0_11] : memref<256x128xf32, #tpu.memory_space<vmem>>, vector<256x128xf32>
      %c0_12 = arith.constant 0 : index
      %c0_13 = arith.constant 0 : index
      %13 = vector.load %arg5[%c0_12, %c0_13] : memref<256x128xf32, #tpu.memory_space<vmem>>, vector<256x128xf32>
      tpu.vector_store %arg5[%c0_12, %c0_13], %12 {strides = array<i32>} : memref<256x128xf32, #tpu.memory_space<vmem>>, vector<256x128xf32>,
    } else {
    }
    return
  }
  func.func @transform_0(%arg0: i32, %arg1: i32, %arg2: i32) -> (i32, i32) {
    %c0_i32 = arith.constant 0 : i32
    return %arg0, %arg2 : i32, i32
  }
  func.func @transform_1(%arg0: i32, %arg1: i32, %arg2: i32) -> (i32, i32) {
    %c0_i32 = arith.constant 0 : i32
    return %arg2, %arg1 : i32, i32
  }
  func.func @transform_2(%arg0: i32, %arg1: i32, %arg2: i32) -> (i32, i32) {
    %c0_i32 = arith.constant 0 : i32
    return %arg0, %arg1 : i32, i32
  }
}

</mosaic_0001>

<bundles_post_ra>
// kernel: run.1
= control target key start
LH: loop header
LB: loop body
LE: loop exit
PB: predicated region body
PF: predicated region fallthrough
CT: control target
= control target key end

     0   :  { %s1081_s9 = smov 0   ;;  %s1083_s10 = smov 0   ;;  %s1194_s0 = inlined_call_operand.vmem [shape: bf16[2048,128], index: 0, kind: input, shape index: {}]   ;;  %s1195_s1 = inlined_call_operand.vmem [shape: bf16[128,128], index: 1, kind: input, shape index: {}]   ;;  %s1196_s2 = inlined_call_operand.vmem [shape: f32[2048,128], index: 2, kind: output, shape index: {}]  }
   0x1   :  { %s1085_s11 = smov 0  }
   0x2 LB: > { %s31_s12 = sadd.s32 1, %s1060_s10  ;;  %p875_p0 = scmp.ge.s32.totalorder %s1064_s11, 1  ;;  %s1064_s11 = sphi %s1085_s11, %s12_s11   ;;  %s1060_s10 = sphi %s1083_s10, %s1198_s10   ;;  %s1056_s9 = sphi %s1081_s9, %s1197_s9  }
   0x3   : > { %p33_p1 = scmp.ge.s32.totalorder %s31_s12, 8  ;;  %p155_p2 = scmp.lt.s32.totalorder %s1064_s11, 9 }
   0x5   : > { %s1200_s12 = smov (%p33_p1, %s31_s12), 0  ;;  %p156_p3 = pnand %p875_p0, %p155_p2 }
   0x6   : > { %v1018_v0 = vld [vmem:[%s1195_s1] sm:$0xff] (!%p156_p3)   ;;  %s876_s15 = sshll.u32 (!%p156_p3), %s1056_s9, 5  ;;  %v1019_v1 = vld [vmem:[%s1195_s1 + $0x8] sm:$0xff] (!%p156_p3)   ;;  %v1020_v2 = vld [vmem:[%s1195_s1 + $0x10] sm:$0xff] (!%p156_p3)  }
   0x7   : > { %159 = sbr.rel (%p156_p3) target bundleno = 279 (0x117), region = 28  ;;  %p192_p4 = scmp.lt.s32.totalorder (!%p156_p3), %s876_s15, 255  ;;  %930 = vmatprep.subr.bf16.mxu0 (!%p156_p3), %v1018_v0  ;;  %978 = vmatprep.subr.bf16.mxu1 (!%p156_p3), %v1018_v0  ;;  %v1021_v3 = vld [vmem:[%s1195_s1 + $0x18] sm:$0xff] (!%p156_p3)   ;;  %v1022_v6 = vld [vmem:[%s1195_s1 + $0x20] sm:$0xff] (!%p156_p3)   ;;  %v1023_v7 = vld [vmem:[%s1195_s1 + $0x28] sm:$0xff] (!%p156_p3)  }
   0x8   : > { %931 = vmatpush3.bf16.msra.mxu0 (!%p156_p3), %v1018_v0  ;;  %986 = vmatpush3.bf16.msra.mxu1 (!%p156_p3), %v1018_v0  ;;  %v1024_v8 = vld [vmem:[%s1195_s1 + $0x30] sm:$0xff] (!%p156_p3)   ;;  %v1025_v9 = vld [vmem:[%s1195_s1 + $0x38] sm:$0xff] (!%p156_p3)  }
   0x9   : > { %932 = vmatprep.subr.bf16.mxu0 (!%p156_p3), %v1019_v1  ;;  %979 = vmatprep.subr.bf16.mxu1 (!%p156_p3), %v1019_v1 }
   0xc   : > { %933 = vmatpush3.bf16.msra.mxu0 (!%p156_p3), %v1019_v1  ;;  %987 = vmatpush3.bf16.msra.mxu1 (!%p156_p3), %v1019_v1 }
   0xd   : > { %934 = vmatprep.subr.bf16.mxu0 (!%p156_p3), %v1020_v2  ;;  %980 = vmatprep.subr.bf16.mxu1 (!%p156_p3), %v1020_v2 }
   0xe   : > { %s1202_s15 = smov (!%p192_p4, %s876_s15), 255 }
   0xf   : > { %s877_s20 = sshll.u32 %s1202_s15, 2  ;;  %s879_s6 = sshll.u32 %s1202_s15, 3 }
  0x10   : > { %s1114_s23 = scalar_lea.vmem %s1194_s0, %s877_s20  ;;  %935 = vmatpush3.bf16.msra.mxu0 %v1020_v2  ;;  %988 = vmatpush3.bf16.msra.mxu1 %v1020_v2  ;;  %s1151_s9 = scalar_lea.vmem %s1196_s2, %s879_s6 }
  0x11   : > { %v1026_v4 = vld [vmem:[%s1114_s23] sm:$0xff]   ;;  %936 = vmatprep.subr.bf16.mxu0 %v1021_v3  ;;  %981 = vmatprep.subr.bf16.mxu1 %v1021_v3  ;;  %v1028_v10 = vld [vmem:[%s1114_s23 + $0x8] sm:$0xff]   ;;  %v1030_v12 = vld [vmem:[%s1114_s23 + $0x10] sm:$0xff]  }
  0x12   : > { %v1027_v5 = vld [vmem:[%s1114_s23 + $0x40] sm:$0xff]   ;;  %946 = vmatprep.mubr.bf16.mxu0 %v1026_v4  ;;  %v1029_v11 = vld [vmem:[%s1114_s23 + $0x48] sm:$0xff]   ;;  %v1031_v13 = vld [vmem:[%s1114_s23 + $0x50] sm:$0xff]  }
  0x13   : > { %962 = vmatprep.mubr.bf16.mxu1 %v1027_v5  ;;  %v1032_v14 = vld [vmem:[%s1114_s23 + $0x18] sm:$0xff]   ;;  %v1034_v16 = vld [vmem:[%s1114_s23 + $0x20] sm:$0xff]   ;;  %v1036_v18 = vld [vmem:[%s1114_s23 + $0x28] sm:$0xff]  }
  0x14   : > { %937 = vmatpush3.bf16.msra.mxu0 %v1021_v3  ;;  %989 = vmatpush3.bf16.msra.mxu1 %v1021_v3  ;;  %v1033_v15 = vld [vmem:[%s1114_s23 + $0x58] sm:$0xff]   ;;  %v1035_v17 = vld [vmem:[%s1114_s23 + $0x60] sm:$0xff]   ;;  %v1037_v19 = vld [vmem:[%s1114_s23 + $0x68] sm:$0xff]  }
  0x15   : > { %938 = vmatprep.subr.bf16.mxu0 %v1022_v6  ;;  %982 = vmatprep.subr.bf16.mxu1 %v1022_v6  ;;  %v1038_v20 = vld [vmem:[%s1114_s23 + $0x30] sm:$0xff]   ;;  %v1040_v22 = vld [vmem:[%s1114_s23 + $0x38] sm:$0xff]  }
  0x16   : > { %v1039_v21 = vld [vmem:[%s1114_s23 + $0x70] sm:$0xff]   ;;  %v1041_v23 = vld [vmem:[%s1114_s23 + $0x78] sm:$0xff]  }
  0x18   : > { %939 = vmatpush3.bf16.msra.mxu0 %v1022_v6  ;;  %990 = vmatpush3.bf16.msra.mxu1 %v1022_v6 }
  0x19   : > { %940 = vmatprep.subr.bf16.mxu0 %v1023_v7  ;;  %983 = vmatprep.subr.bf16.mxu1 %v1023_v7 }
  0x1c   : > { %941 = vmatpush3.bf16.msra.mxu0 %v1023_v7  ;;  %991 = vmatpush3.bf16.msra.mxu1 %v1023_v7 }
  0x1d   : > { %942 = vmatprep.subr.bf16.mxu0 %v1024_v8  ;;  %984 = vmatprep.subr.bf16.mxu1 %v1024_v8 }
  0x20   : > { %943 = vmatpush3.bf16.msra.mxu0 %v1024_v8  ;;  %992 = vmatpush3.bf16.msra.mxu1 %v1024_v8 }
  0x21   : > { %944 = vmatprep.subr.bf16.mxu0 %v1025_v9  ;;  %985 = vmatprep.subr.bf16.mxu1 %v1025_v9 }
  0x24   : > { %945 = vmatpush3.bf16.msra.mxu0 %v1025_v9  ;;  %993 = vmatpush3.bf16.msra.mxu1 %v1025_v9 }
  0x27   : > { %947 = vmatmul.mubr.bf16.vlgmr.msra.gmra.mrb[0].mxu0 %v1028_v10  ;;  %963 = vmatmul.mubr.bf16.vlgmr.msra.gmra.mrb[0].mxu1 %v1029_v11 }
  0x28   : > { %950 = vmatprep.mubr.bf16.mxu0 %v1030_v12  ;;  %966 = vmatprep.mubr.bf16.mxu1 %v1031_v13 }
  0x2f   : > { %951 = vmatmul.mubr.bf16.gmra.mrb[4].mxu0 %v1032_v14  ;;  %967 = vmatmul.mubr.bf16.gmra.mrb[4].mxu1 %v1033_v15 }
  0x30   : > { %954 = vmatprep.mubr.bf16.mxu0 %v1034_v16  ;;  %970 = vmatprep.mubr.bf16.mxu1 %v1035_v17 }
  0x37   : > { %955 = vmatmul.mubr.bf16.gmra.mrb[8].mxu0 %v1036_v18  ;;  %971 = vmatmul.mubr.bf16.gmra.mrb[8].mxu1 %v1037_v19 }
  0x38   : > { %958 = vmatprep.mubr.bf16.mxu0 %v1038_v20  ;;  %974 = vmatprep.mubr.bf16.mxu1 %v1039_v21 }
  0x3f   : > { %959 = vmatmul.mubr.bf16.gmra.mrb[12].mxu0 %v1040_v22  ;;  %975 = vmatmul.mubr.bf16.gmra.mrb[12].mxu1 %v1041_v23 }
  0xfa   : > { %v948_v24 = vpop.f32.mrb[0].mxu0  ;;  %v964_v25 = vpop.f32.mrb[0].mxu1 }
  0xfb   : > { %741 = vst [vmem:[%s1151_s9 + $0x10] sm:$0xff] %v948_v24  ;;  %757 = vst [vmem:[%s1151_s9 + $0x90] sm:$0xff] %v964_v25  ;;  %v513_v26 = vpop.f32.mrb[1].mxu0  ;;  %v577_v27 = vpop.f32.mrb[1].mxu1 }
  0xfc   : > { %739 = vst [vmem:[%s1151_s9] sm:$0xff] %v513_v26  ;;  %755 = vst [vmem:[%s1151_s9 + $0x80] sm:$0xff] %v577_v27  ;;  %v949_v28 = vpop.f32.mrb[2].mxu0  ;;  %v965_v29 = vpop.f32.mrb[2].mxu1 }
  0xfd   : > { %742 = vst [vmem:[%s1151_s9 + $0x18] sm:$0xff] %v949_v28  ;;  %758 = vst [vmem:[%s1151_s9 + $0x98] sm:$0xff] %v965_v29  ;;  %v516_v30 = vpop.f32.mrb[3].mxu0  ;;  %v580_v31 = vpop.f32.mrb[3].mxu1 }
  0xfe   : > { %740 = vst [vmem:[%s1151_s9 + $0x8] sm:$0xff] %v516_v30  ;;  %756 = vst [vmem:[%s1151_s9 + $0x88] sm:$0xff] %v580_v31 }
 0x102   : > { %v952_v32 = vpop.f32.mrb[4].mxu0  ;;  %v968_v33 = vpop.f32.mrb[4].mxu1 }
 0x103   : > { %745 = vst [vmem:[%s1151_s9 + $0x30] sm:$0xff] %v952_v32  ;;  %761 = vst [vmem:[%s1151_s9 + $0xb0] sm:$0xff] %v968_v33  ;;  %v529_v34 = vpop.f32.mrb[5].mxu0  ;;  %v593_v35 = vpop.f32.mrb[5].mxu1 }
 0x104   : > { %743 = vst [vmem:[%s1151_s9 + $0x20] sm:$0xff] %v529_v34  ;;  %759 = vst [vmem:[%s1151_s9 + $0xa0] sm:$0xff] %v593_v35  ;;  %v953_v36 = vpop.f32.mrb[6].mxu0  ;;  %v969_v37 = vpop.f32.mrb[6].mxu1 }
 0x105   : > { %746 = vst [vmem:[%s1151_s9 + $0x38] sm:$0xff] %v953_v36  ;;  %762 = vst [vmem:[%s1151_s9 + $0xb8] sm:$0xff] %v969_v37  ;;  %v532_v38 = vpop.f32.mrb[7].mxu0  ;;  %v596_v39 = vpop.f32.mrb[7].mxu1 }
 0x106   : > { %744 = vst [vmem:[%s1151_s9 + $0x28] sm:$0xff] %v532_v38  ;;  %760 = vst [vmem:[%s1151_s9 + $0xa8] sm:$0xff] %v596_v39 }
 0x10a   : > { %v956_v40 = vpop.f32.mrb[8].mxu0  ;;  %v972_v41 = vpop.f32.mrb[8].mxu1 }
 0x10b   : > { %749 = vst [vmem:[%s1151_s9 + $0x50] sm:$0xff] %v956_v40  ;;  %765 = vst [vmem:[%s1151_s9 + $0xd0] sm:$0xff] %v972_v41  ;;  %v545_v42 = vpop.f32.mrb[9].mxu0  ;;  %v609_v43 = vpop.f32.mrb[9].mxu1 }
 0x10c   : > { %747 = vst [vmem:[%s1151_s9 + $0x40] sm:$0xff] %v545_v42  ;;  %763 = vst [vmem:[%s1151_s9 + $0xc0] sm:$0xff] %v609_v43  ;;  %v957_v44 = vpop.f32.mrb[10].mxu0  ;;  %v973_v45 = vpop.f32.mrb[10].mxu1 }
 0x10d   : > { %750 = vst [vmem:[%s1151_s9 + $0x58] sm:$0xff] %v957_v44  ;;  %766 = vst [vmem:[%s1151_s9 + $0xd8] sm:$0xff] %v973_v45  ;;  %v548_v46 = vpop.f32.mrb[11].mxu0  ;;  %v612_v47 = vpop.f32.mrb[11].mxu1 }
 0x10e   : > { %748 = vst [vmem:[%s1151_s9 + $0x48] sm:$0xff] %v548_v46  ;;  %764 = vst [vmem:[%s1151_s9 + $0xc8] sm:$0xff] %v612_v47 }
 0x112   : > { %v960_v48 = vpop.f32.mrb[12].mxu0  ;;  %v976_v49 = vpop.f32.mrb[12].mxu1 }
 0x113   : > { %753 = vst [vmem:[%s1151_s9 + $0x70] sm:$0xff] %v960_v48  ;;  %769 = vst [vmem:[%s1151_s9 + $0xf0] sm:$0xff] %v976_v49  ;;  %v561_v50 = vpop.f32.mrb[13].mxu0  ;;  %v625_v51 = vpop.f32.mrb[13].mxu1 }
 0x114   : > { %751 = vst [vmem:[%s1151_s9 + $0x60] sm:$0xff] %v561_v50  ;;  %767 = vst [vmem:[%s1151_s9 + $0xe0] sm:$0xff] %v625_v51  ;;  %v961_v52 = vpop.f32.mrb[14].mxu0  ;;  %v977_v53 = vpop.f32.mrb[14].mxu1 }
 0x115   : > { %754 = vst [vmem:[%s1151_s9 + $0x78] sm:$0xff] %v961_v52  ;;  %770 = vst [vmem:[%s1151_s9 + $0xf8] sm:$0xff] %v977_v53  ;;  %v564_v54 = vpop.f32.mrb[15].mxu0  ;;  %v628_v55 = vpop.f32.mrb[15].mxu1 }
 0x116   : > { %752 = vst [vmem:[%s1151_s9 + $0x68] sm:$0xff] %v564_v54  ;;  %768 = vst [vmem:[%s1151_s9 + $0xe8] sm:$0xff] %v628_v55 }
 0x117 PF: > { %s12_s11 = sadd.s32 1, %s1064_s11   ;;  %s1197_s9 = smov %s1060_s10 }
 0x118   : > { %p9_p5 = scmp.ge.s32.totalorder %s12_s11, 10   ;;  %s1198_s10 = smov %s1200_s12 }
 0x11a   :  { %11 = sbr.rel (!%p9_p5) target bundleno = 2 (0x2), region = 69 }

</bundles_post_ra>
